<compile_context>
chip_gen: v6e
topology: v6e:2x2x1
jax: 0.10.0
libtpu: 0.0.40
codegen_flags: <defaults>
</compile_context>

<pallas_src>
import jax
import jax.numpy as jnp
from jax.experimental import pallas as pl
from jax.experimental.pallas import tpu as pltpu


# ----------------------------------------------------------------------------
# Path 2: zero-copy identity via input/output aliasing (for jit + donation).
# ----------------------------------------------------------------------------
def _alias_identity_kernel(x_ref, o_ref):
    # Output aliases the input buffer (input_output_aliases={0: 0}); an
    # identity needs no DMA and no compute, so the body is intentionally empty.
    del x_ref, o_ref


def dummy_transformer_block_aliased(x: jax.Array) -> jax.Array:
    """Aliased identity. Only zero-traffic under jax.jit(..., donate_argnums=0);
    without donation XLA inserts a defensive copy to satisfy the alias."""
    return pl.pallas_call(
        _alias_identity_kernel,
        out_shape=jax.ShapeDtypeStruct(x.shape, x.dtype),
        in_specs=[pl.BlockSpec(memory_space=pl.ANY)],   # leave x in HBM, no auto-DMA
        out_specs=pl.BlockSpec(memory_space=pl.ANY),    # output stays in HBM
        input_output_aliases={0: 0},                    # output buffer == input buffer
    )(x)


# ----------------------------------------------------------------------------
# Path 3: materializing copy via direct HBM->HBM DMA (no VMEM staging).
# ----------------------------------------------------------------------------
_MAX_CHUNKS = 8               # DMAs in flight (engages multiple DMA queues)
_MIN_CHUNK_BYTES = 1 << 20    # don't split below ~1 MiB per DMA


def _chunk_bounds(dim0: int, nchunks: int):
    """Split [0, dim0) into nchunks near-equal static (start, size) ranges."""
    base, rem = divmod(dim0, nchunks)
    bounds, start = [], 0
    for i in range(nchunks):
        size = base + (1 if i < rem else 0)
        if size:
            bounds.append((start, size))
            start += size
    return bounds


def _dma_copy(x: jax.Array) -> jax.Array:
    orig_shape = x.shape
    if x.ndim == 0:
        x = x.reshape(1)

    nbytes = x.size * jnp.dtype(x.dtype).itemsize
    dim0 = x.shape[0]

    # Enough chunks to engage several DMA engines, but never tiny DMAs.
    nchunks = max(1, min(_MAX_CHUNKS, dim0, nbytes // _MIN_CHUNK_BYTES))
    bounds = _chunk_bounds(dim0, nchunks)
    nchunks = len(bounds)

    def kernel(x_hbm, o_hbm, sems):
        # Issue every chunk DMA (all in flight), then drain them.  Both refs
        # live in HBM, so the copy never touches VMEM or the TensorCore.
        copies = []
        for idx, (start, size) in enumerate(bounds):
            cp = pltpu.make_async_copy(
                x_hbm.at[pl.ds(start, size)],
                o_hbm.at[pl.ds(start, size)],
                sems.at[idx],
            )
            cp.start()
            copies.append(cp)
        for cp in copies:
            cp.wait()

    out = pl.pallas_call(
        kernel,
        out_shape=jax.ShapeDtypeStruct(x.shape, x.dtype),
        in_specs=[pl.BlockSpec(memory_space=pl.ANY)],   # src stays in HBM
        out_specs=pl.BlockSpec(memory_space=pl.ANY),    # dst stays in HBM
        scratch_shapes=[pltpu.SemaphoreType.DMA((nchunks,))],
        cost_estimate=pl.CostEstimate(
            flops=0,
            transcendentals=0,
            bytes_accessed=2 * nbytes,
        ),
    )(x)
    return out.reshape(orig_shape)


# ----------------------------------------------------------------------------
# Public wrapper (matches DummyTransformerBlock.forward semantics).
# ----------------------------------------------------------------------------
def dummy_transformer_block(x: jax.Array, materialize: bool = False) -> jax.Array:
    """Pallas equivalent of DummyTransformerBlock.forward(x) -> x.

    materialize=False: passthrough (zero cost; preferred).
    materialize=True : fresh output buffer via a direct HBM->HBM DMA copy.
    For jit(..., donate_argnums=0) callers wanting an explicit kernel, use
    dummy_transformer_block_aliased (zero-traffic under donation).
    """
    if materialize:
        return _dma_copy(x)
    return x


if __name__ == "__main__":
    key = jax.random.PRNGKey(0)
    batch, seq, emb = 2, 8, 32
    x = jax.random.normal(key, (batch, seq, emb), dtype=jnp.float32)

    # 1) Default passthrough (truly zero cost, no hidden defensive copy).
    y = dummy_transformer_block(x)
    jax.block_until_ready(y)
    assert y.shape == x.shape and y.dtype == x.dtype
    assert bool(jnp.array_equal(y, x))

    # 2) Materializing HBM->HBM DMA copy (fresh buffer).
    y2 = dummy_transformer_block(x, materialize=True)
    jax.block_until_ready(y2)
    assert y2.shape == x.shape and y2.dtype == x.dtype
    assert bool(jnp.array_equal(y2, x))

    # 2b) Odd, non-128-divisible shape goes through the same DMA path
    #     (no (8,128) BlockSpec constraint, no VMEM blow-up).
    x_odd = jax.random.normal(jax.random.PRNGKey(1), (3, 5, 7), dtype=jnp.float32)
    y_odd = dummy_transformer_block(x_odd, materialize=True)
    jax.block_until_ready(y_odd)
    assert y_odd.shape == x_odd.shape and y_odd.dtype == x_odd.dtype
    assert bool(jnp.array_equal(y_odd, x_odd))

    # 3) Aliased identity under jit + donation -> HBM round-trip elided.
    donated_block = jax.jit(dummy_transformer_block_aliased, donate_argnums=0)
    y3 = donated_block(jnp.copy(x))
    jax.block_until_ready(y3)
    assert bool(jnp.array_equal(y3, x))

    print("KERNEL_OK")
</pallas_src>

<mosaic_0001>
module attributes {stable_mosaic.version = 11 : i64} {
  func.func @kernel(%arg0: memref<2x8x32xf32, #tpu.memory_space<any>>, %arg1: memref<2x8x32xf32, #tpu.memory_space<any>>, %arg2: memref<1x!tpu.dma_semaphore, #tpu.memory_space<semaphore_mem>>) attributes {dimension_semantics = [], scalar_prefetch = 0 : i64, scratch_operands = 1 : i64, tpu.core_type = #tpu.core_type<tc>} {
    %c0_i32 = arith.constant 0 : i32
    %c0_i32_0 = arith.constant 0 : i32
    %c0_i32_1 = arith.constant 0 : i32
    %c0_i32_2 = arith.constant 0 : i32
    %0 = tpu.memref_slice %arg0[%c0_i32_0, %c0_i32_1, %c0_i32_2] : memref<2x8x32xf32, #tpu.memory_space<any>> -> memref<2x8x32xf32, #tpu.memory_space<any>>
    %c0_i32_3 = arith.constant 0 : i32
    %c0_i32_4 = arith.constant 0 : i32
    %c0_i32_5 = arith.constant 0 : i32
    %1 = tpu.memref_slice %arg1[%c0_i32_3, %c0_i32_4, %c0_i32_5] : memref<2x8x32xf32, #tpu.memory_space<any>> -> memref<2x8x32xf32, #tpu.memory_space<any>>
    %2 = tpu.memref_slice %arg2[%c0_i32] : memref<1x!tpu.dma_semaphore, #tpu.memory_space<semaphore_mem>> -> memref<1x!tpu.dma_semaphore, #tpu.memory_space<semaphore_mem>>
    %3 = tpu.memref_squeeze %2 : memref<1x!tpu.dma_semaphore, #tpu.memory_space<semaphore_mem>> -> memref<!tpu.dma_semaphore, #tpu.memory_space<semaphore_mem>>
    tpu.enqueue_dma source(%0 : memref<2x8x32xf32, #tpu.memory_space<any>>) target(%1 : memref<2x8x32xf32, #tpu.memory_space<any>>) target_semaphore(%3 : memref<!tpu.dma_semaphore, #tpu.memory_space<semaphore_mem>>)
    %c0_i32_6 = arith.constant 0 : i32
    %c0_i32_7 = arith.constant 0 : i32
    %c0_i32_8 = arith.constant 0 : i32
    %c0_i32_9 = arith.constant 0 : i32
    %4 = tpu.memref_slice %arg0[%c0_i32_7, %c0_i32_8, %c0_i32_9] : memref<2x8x32xf32, #tpu.memory_space<any>> -> memref<2x8x32xf32, #tpu.memory_space<any>>
    %c0_i32_10 = arith.constant 0 : i32
    %c0_i32_11 = arith.constant 0 : i32
    %c0_i32_12 = arith.constant 0 : i32
    %5 = tpu.memref_slice %arg1[%c0_i32_10, %c0_i32_11, %c0_i32_12] : memref<2x8x32xf32, #tpu.memory_space<any>> -> memref<2x8x32xf32, #tpu.memory_space<any>>
    %6 = tpu.memref_slice %arg2[%c0_i32_6] : memref<1x!tpu.dma_semaphore, #tpu.memory_space<semaphore_mem>> -> memref<1x!tpu.dma_semaphore, #tpu.memory_space<semaphore_mem>>
    %7 = tpu.memref_squeeze %6 : memref<1x!tpu.dma_semaphore, #tpu.memory_space<semaphore_mem>> -> memref<!tpu.dma_semaphore, #tpu.memory_space<semaphore_mem>>
    tpu.wait_dma2 semaphore(%7 : memref<!tpu.dma_semaphore, #tpu.memory_space<semaphore_mem>>) src(%4 : memref<2x8x32xf32, #tpu.memory_space<any>>) dst(%5 : memref<2x8x32xf32, #tpu.memory_space<any>>)
    return
  }
}

</mosaic_0001>

<bundles_post_ra>
// kernel: tpu_custom_call.1
= control target key start
LH: loop header
LB: loop body
LE: loop exit
PB: predicated region body
PF: predicated region fallthrough
CT: control target
= control target key end

     0   :  { %s29_s6 = smov [#allocation2]   ;;  %s30_s7 = smov 131072   ;;  %s48_s0 = inlined_call_operand.hbm [shape: f32[2,8,32], index: 0, kind: input, shape index: {}]   ;;  %s49_s1 = inlined_call_operand.hbm [shape: f32[2,8,32], index: 1, kind: output, shape index: {}]  }
   0x1   :  { %s31_s8 = smov 0  }
   0x2   :  { %12 = dma.general %s48_s0, 256, %s49_s1, %s29_s6, %s30_s7, [#allocation4], %s31_s8, 0  }
   0x3   :  { %27 = dma.done.wait [#allocation2], 256 }
   0x4   :  { %28 = vsyncadd [#allocation2], 4294967040 }
   0x5   :  { %17 = vsyncmov [#allocation2] }
   0x8   :  { %s18_s13 = vpop.sfrf %17 }
   0x9   :  { %p23_p0 = scmp.ne.s32.totalorder %s18_s13, 0 }
   0xb   :  { %22 = shalt.err (%p23_p0)  }

</bundles_post_ra>
